<compile_context>
chip_gen: v6e
topology: v6e:2x2x1
jax: 0.10.0
libtpu: 0.0.40
codegen_flags: <defaults>
</compile_context>

<pallas_src>
import functools

import jax
import jax.numpy as jnp
from jax.experimental import pallas as pl
from jax.experimental.pallas import tpu as pltpu

LANE = 128
SUBLANE = 8


def _round_up(x, m):
    return (x + m - 1) // m * m


def _num_m_tiles():
    """2 parallel M-tiles on v7x (one per TensorCore); 1 tile (grid=1) on
    single-TC v5e/v6e to avoid per-grid-step overhead."""
    try:
        kind = jax.devices()[0].device_kind.lower()
    except Exception:
        return 1
    return 2 if ("v7" in kind or "7x" in kind) else 1


# ----------------------------------------------------------------------------
# Pallas kernels
# ----------------------------------------------------------------------------
def _conv_relu_pool_kernel(p_ref, w_ref, b_ref, o_ref, *, n_win, out_ch):
    # p_ref: (n_win, tm, Kp) bf16  -- one im2col patch set per pool-window offset
    # w_ref: (Kp, Np) bf16, b_ref: (1, Np) f32, o_ref: (tm, out_ch) bf16
    w = w_ref[...]
    acc = jnp.dot(p_ref[0], w, preferred_element_type=jnp.float32)
    for i in range(1, n_win):
        acc = jnp.maximum(
            acc, jnp.dot(p_ref[i], w, preferred_element_type=jnp.float32))
    # max(relu(x_i + b)) == relu(max(x_i) + b): pool on the f32 accumulator,
    # then bias + ReLU, single downcast, store only the real channels.
    y = jnp.maximum(acc + b_ref[...], 0.0)
    o_ref[...] = y[:, :out_ch].astype(o_ref.dtype)


def _fused_mlp_kernel(x_ref, w1_ref, b1_ref, w2_ref, b2_ref, o_ref):
    # Linear -> ReLU -> Linear; activation stays resident in VMEM/vregs.
    h = x_ref[...]                                                    # bf16
    a1 = jnp.dot(h, w1_ref[...], preferred_element_type=jnp.float32) + b1_ref[...]
    h1 = jnp.maximum(a1, 0.0).astype(jnp.bfloat16)
    a2 = jnp.dot(h1, w2_ref[...], preferred_element_type=jnp.float32) + b2_ref[...]
    o_ref[...] = a2


# ----------------------------------------------------------------------------
# pallas_call wrappers
# ----------------------------------------------------------------------------
def conv_relu_pool(patches, conv_w, conv_b, out_ch, m_tiles):
    """Fused Conv(im2col matmul) + bias + ReLU + MaxPool.

    patches: (n_win, Mp, Kp) bf16, conv_w: (Kp, Np) bf16, conv_b: (1, Np) f32.
    Returns (Mp, out_ch) bf16 (rows = (b, oh2, ow2), lanes = real channels).
    """
    n_win, Mp, Kp = patches.shape
    _, Np = conv_w.shape
    tm = Mp // m_tiles
    cost = pl.CostEstimate(
        flops=2 * n_win * Mp * Kp * Np + 3 * Mp * Np,
        transcendentals=0,
        bytes_accessed=patches.size * 2 + conv_w.size * 2
        + conv_b.size * 4 + Mp * out_ch * 2)
    kernel = functools.partial(_conv_relu_pool_kernel, n_win=n_win, out_ch=out_ch)
    return pl.pallas_call(
        kernel,
        out_shape=jax.ShapeDtypeStruct((Mp, out_ch), jnp.bfloat16),
        grid_spec=pltpu.PrefetchScalarGridSpec(
            num_scalar_prefetch=0,
            grid=(m_tiles,),
            in_specs=[
                pl.BlockSpec((n_win, tm, Kp), lambda i: (0, i, 0)),
                pl.BlockSpec((Kp, Np), lambda i: (0, 0)),
                pl.BlockSpec((1, Np), lambda i: (0, 0)),
            ],
            out_specs=pl.BlockSpec((tm, out_ch), lambda i: (i, 0)),
        ),
        compiler_params=pltpu.CompilerParams(dimension_semantics=("parallel",)),
        cost_estimate=cost,
    )(patches, conv_w, conv_b)


def fused_mlp(x, w1, b1, w2, b2):
    """Fused Linear -> ReLU -> Linear.  x: (Bp, K0) bf16."""
    Bp, K0 = x.shape
    Hp = w1.shape[1]
    Op = w2.shape[1]
    cost = pl.CostEstimate(
        flops=2 * Bp * (K0 * Hp + Hp * Op) + 2 * Bp * (Hp + Op),
        transcendentals=0,
        bytes_accessed=(x.size + w1.size + w2.size) * 2
        + (b1.size + b2.size) * 4 + Bp * Op * 4)
    return pl.pallas_call(
        _fused_mlp_kernel,
        out_shape=jax.ShapeDtypeStruct((Bp, Op), jnp.float32),
        grid_spec=pltpu.PrefetchScalarGridSpec(
            num_scalar_prefetch=0,
            grid=(1,),
            in_specs=[
                pl.BlockSpec((Bp, K0), lambda i: (0, 0)),
                pl.BlockSpec(w1.shape, lambda i: (0, 0)),
                pl.BlockSpec(b1.shape, lambda i: (0, 0)),
                pl.BlockSpec(w2.shape, lambda i: (0, 0)),
                pl.BlockSpec(b2.shape, lambda i: (0, 0)),
            ],
            out_specs=pl.BlockSpec((Bp, Op), lambda i: (0, 0)),
        ),
        compiler_params=pltpu.CompilerParams(dimension_semantics=("arbitrary",)),
        cost_estimate=cost,
    )(x, w1, b1, w2, b2)


# ----------------------------------------------------------------------------
# Layout glue (XLA-side, static slicing only)
# ----------------------------------------------------------------------------
def _im2col_pool_offsets(x_nchw, ksz, stride, pad, pool_k, pool_s, kpad, m_pad):
    """Build one im2col patch set per pooling-window offset, directly in bf16.

    Returns (pool_k*pool_k, m_pad, kpad) bf16; row m = b*OH2*OW2 + oh2*OW2 + ow2,
    feature index = (kh*ksz + kw)*C + ci (zero-padded to kpad lanes)."""
    B, C, H, W = x_nchw.shape
    OH = (H + 2 * pad - ksz) // stride + 1
    OW = (W + 2 * pad - ksz) // stride + 1
    OH2 = (OH - pool_k) // pool_s + 1
    OW2 = (OW - pool_k) // pool_s + 1
    x = jnp.transpose(x_nchw, (0, 2, 3, 1)).astype(jnp.bfloat16)   # NHWC, bf16 once
    x = jnp.pad(x, ((0, 0), (pad, pad), (pad, pad), (0, 0)))
    step = pool_s * stride
    offsets = []
    for dh in range(pool_k):
        for dw in range(pool_k):
            feats = []
            for kh in range(ksz):
                for kw in range(ksz):
                    r0 = dh * stride + kh
                    c0 = dw * stride + kw
                    v = x[:, r0:r0 + step * (OH2 - 1) + 1:step,
                             c0:c0 + step * (OW2 - 1) + 1:step, :]   # (B,OH2,OW2,C)
                    feats.append(v)
            p = jnp.stack(feats, axis=3).reshape(B * OH2 * OW2, ksz * ksz * C)
            offsets.append(p)
    patches = jnp.stack(offsets, axis=0)                             # (pk*pk, M2, K)
    M2, K = patches.shape[1], patches.shape[2]
    patches = jnp.pad(patches, ((0, 0), (0, m_pad - M2), (0, kpad - K)))
    return patches


# ----------------------------------------------------------------------------
# Parameters (PyTorch layouts) + one-time layout preparation
# ----------------------------------------------------------------------------
def init_convnet_params(key, in_channels, conv_channels, kernel_size,
                        fc_in, hidden, out_features):
    params = {}
    key, k1, k2 = jax.random.split(key, 3)
    fan_in = in_channels * kernel_size * kernel_size
    bound = 1.0 / jnp.sqrt(fan_in)
    params["conv_w"] = jax.random.uniform(
        k1, (conv_channels, in_channels, kernel_size, kernel_size),
        jnp.float32, -bound, bound)                          # OIHW (PyTorch)
    params["conv_b"] = jax.random.uniform(k2, (conv_channels,), jnp.float32,
                                          -bound, bound)
    params["fc"] = []
    for fi, fo in [(fc_in, hidden), (hidden, out_features)]:
        key, kw, kb = jax.random.split(key, 3)
        bound = 1.0 / jnp.sqrt(fi)
        w = jax.random.uniform(kw, (fo, fi), jnp.float32, -bound, bound)  # (out,in)
        b = jax.random.uniform(kb, (fo,), jnp.float32, -bound, bound)
        params["fc"].append((w, b))
    return params


def prepare_params(params, pooled_hw):
    """One-time transform: (in, out) layout, lane-padding, bf16 weights / f32
    biases.  FC1's rows are permuted so that the kernel's (s, c)-ordered
    flatten of the pooled activation matches PyTorch's NCHW flatten."""
    prep = {}
    cw, cb = params["conv_w"], params["conv_b"]
    O, I, K, _ = cw.shape
    Np = _round_up(O, LANE)
    kk = K * K * I
    Kp = _round_up(kk, LANE)
    cwt = jnp.transpose(cw, (2, 3, 1, 0)).reshape(kk, O)     # rows: (kh, kw, ci)
    prep["conv_w"] = jnp.pad(cwt, ((0, Kp - kk), (0, Np - O))).astype(jnp.bfloat16)
    prep["conv_b"] = jnp.pad(cb, (0, Np - O)).reshape(1, Np).astype(jnp.float32)

    C = O
    S = pooled_hw
    # kernel flatten index r = s*C + c  <-  PyTorch NCHW flatten index c*S + s
    perm = (jnp.arange(S)[:, None] + S * jnp.arange(C)[None, :]).reshape(-1)

    (w1, b1), (w2, b2) = params["fc"]
    hidden, out_features = w1.shape[0], w2.shape[0]
    Hp = _round_up(hidden, LANE)
    Op = _round_up(out_features, LANE)
    w1t = w1.T[perm]                                          # (S*C, hidden)
    prep["fc1_w"] = jnp.pad(w1t, ((0, 0), (0, Hp - hidden))).astype(jnp.bfloat16)
    prep["fc1_b"] = jnp.pad(b1, (0, Hp - hidden)).reshape(1, Hp).astype(jnp.float32)
    w2t = w2.T                                                # (hidden, out)
    prep["fc2_w"] = jnp.pad(
        w2t, ((0, Hp - hidden), (0, Op - out_features))).astype(jnp.bfloat16)
    prep["fc2_b"] = jnp.pad(b2, (0, Op - out_features)).reshape(1, Op).astype(jnp.float32)
    return prep


# ----------------------------------------------------------------------------
# Forward pass
# ----------------------------------------------------------------------------
def convnet_forward(x, prep, *, ksz, stride, pad, pool_k, pool_s,
                    conv_channels, out_features, m_tiles):
    B, C, H, W = x.shape
    OH = (H + 2 * pad - ksz) // stride + 1
    OW = (W + 2 * pad - ksz) // stride + 1
    OH2 = (OH - pool_k) // pool_s + 1
    OW2 = (OW - pool_k) // pool_s + 1
    M2 = B * OH2 * OW2
    Mp = _round_up(M2, SUBLANE * m_tiles)
    Kp = prep["conv_w"].shape[0]

    # Fused Conv + bias + ReLU + MaxPool (single Pallas kernel).
    patches = _im2col_pool_offsets(x, ksz, stride, pad, pool_k, pool_s, Kp, Mp)
    pooled = conv_relu_pool(patches, prep["conv_w"], prep["conv_b"],
                            conv_channels, m_tiles)           # (Mp, C) bf16
    pooled = pooled[:M2]                                      # no-op when Mp == M2

    # Flatten: plain (free) reshape; NCHW ordering is folded into fc1_w rows.
    flat = pooled.reshape(B, OH2 * OW2 * conv_channels)
    Bp = _round_up(B, SUBLANE)
    feat = jnp.pad(flat, ((0, Bp - B), (0, 0)))               # bf16 (Bp, 512)

    # Fused FC head: Linear -> ReLU -> Linear (single Pallas kernel).
    out = fused_mlp(feat, prep["fc1_w"], prep["fc1_b"],
                    prep["fc2_w"], prep["fc2_b"])             # (Bp, Op) f32
    return out[:B, :out_features]


# ----------------------------------------------------------------------------
# Pure-JAX reference (PyTorch-layout params, mirrors the kernel's bf16 casts)
# ----------------------------------------------------------------------------
def reference_forward(x, params, *, stride, padding, pool_k, pool_s):
    f32, bf16 = jnp.float32, jnp.bfloat16
    q = lambda a: a.astype(bf16).astype(f32)
    y = jax.lax.conv_general_dilated(
        q(x), q(params["conv_w"]),
        window_strides=(stride, stride),
        padding=((padding, padding), (padding, padding)),
        dimension_numbers=("NCHW", "OIHW", "NCHW"),
        precision=jax.lax.Precision.HIGHEST)
    y = jnp.maximum(y + params["conv_b"].reshape(1, -1, 1, 1), 0.0)
    B_, C_, H_, W_ = y.shape
    y = y.reshape(B_, C_, H_ // pool_s, pool_k, W_ // pool_s, pool_k).max(axis=(3, 5))
    h = y.reshape(B_, -1)                                     # PyTorch NCHW flatten
    for i, (w, b) in enumerate(params["fc"]):
        h = jnp.dot(q(h), q(w).T, precision=jax.lax.Precision.HIGHEST) + b
        if i < len(params["fc"]) - 1:
            h = jnp.maximum(h, 0.0)
    return h


if __name__ == "__main__":
    key = jax.random.PRNGKey(0)
    kx, kp = jax.random.split(key)

    # ConvNet((2,4,16,16), "Conv8,3,1,1-ReLU-Pool2,2--Flatten-FC32-ReLU-FC10")
    B, C, H, W = 2, 4, 16, 16
    conv_channels, ksz, stride, pad = 8, 3, 1, 1
    pool_k, pool_s = 2, 2
    hidden, out_features = 32, 10

    OH, OW = H, W                       # k=3, s=1, p=1 preserves spatial size
    OH2, OW2 = OH // pool_s, OW // pool_s
    fc_in = conv_channels * OH2 * OW2   # 512

    x = jax.random.normal(kx, (B, C, H, W), jnp.float32)
    params = init_convnet_params(kp, C, conv_channels, ksz, fc_in, hidden,
                                 out_features)
    prep = prepare_params(params, OH2 * OW2)
    m_tiles = _num_m_tiles()

    fwd = jax.jit(functools.partial(
        convnet_forward, ksz=ksz, stride=stride, pad=pad,
        pool_k=pool_k, pool_s=pool_s, conv_channels=conv_channels,
        out_features=out_features, m_tiles=m_tiles))

    out = jax.block_until_ready(fwd(x, prep))

    ref = reference_forward(x, params, stride=stride, padding=pad,
                            pool_k=pool_k, pool_s=pool_s)
    assert out.shape == (B, out_features)
    assert jnp.allclose(out, ref, atol=1e-2, rtol=1e-2), (
        f"max abs err {jnp.max(jnp.abs(out - ref))}")

    print("KERNEL_OK")
</pallas_src>

<mosaic_0001>
module attributes {stable_mosaic.version = 11 : i64} {
  func.func @_conv_relu_pool_kernel(%arg0: i32, %arg1: memref<4x128x128xbf16, #tpu.memory_space<vmem>>, %arg2: memref<128x128xbf16, #tpu.memory_space<vmem>>, %arg3: memref<1x128xf32, #tpu.memory_space<vmem>>, %arg4: memref<128x8xbf16, #tpu.memory_space<vmem>>) attributes {dimension_semantics = [#tpu.dimension_semantics<parallel>], iteration_bounds = array<i64: 1>, scalar_prefetch = 0 : i64, scratch_operands = 0 : i64, tpu.core_type = #tpu.core_type<tc>, window_params = [{transform_indices = @transform_0, window_bounds = array<i64: 4, 128, 128>}, {pipeline_mode = #tpu.pipeline_mode<synchronous>, transform_indices = @transform_1, window_bounds = array<i64: 128, 128>}, {pipeline_mode = #tpu.pipeline_mode<synchronous>, transform_indices = @transform_2, window_bounds = array<i64: 1, 128>}, {transform_indices = @transform_3, window_bounds = array<i64: 128, 8>}]} {
    %c0 = arith.constant 0 : index
    %c0_0 = arith.constant 0 : index
    %0 = vector.load %arg2[%c0, %c0_0] : memref<128x128xbf16, #tpu.memory_space<vmem>>, vector<128x128xbf16>
    %c0_1 = arith.constant 0 : index
    %c0_2 = arith.constant 0 : index
    %c0_3 = arith.constant 0 : index
    %1 = vector.load %arg1[%c0_1, %c0_2, %c0_3] : memref<4x128x128xbf16, #tpu.memory_space<vmem>>, vector<1x128x128xbf16>
    %2 = vector.shape_cast %1 : vector<1x128x128xbf16> to vector<128x128xbf16>
    %cst = arith.constant dense<0.000000e+00> : vector<128x128xf32>
    %3 = tpu.matmul %2, %0, %cst {dimension_numbers = #tpu.dot_dimension_numbers<[1], [0], [0], [1], [0, 0, 1, 1], [], []>} : vector<128x128xbf16>, vector<128x128xbf16>, vector<128x128xf32> -> vector<128x128xf32>
    %c1 = arith.constant 1 : index
    %c0_4 = arith.constant 0 : index
    %c0_5 = arith.constant 0 : index
    %4 = vector.load %arg1[%c1, %c0_4, %c0_5] : memref<4x128x128xbf16, #tpu.memory_space<vmem>>, vector<1x128x128xbf16>
    %5 = vector.shape_cast %4 : vector<1x128x128xbf16> to vector<128x128xbf16>
    %cst_6 = arith.constant dense<0.000000e+00> : vector<128x128xf32>
    %6 = tpu.matmul %5, %0, %cst_6 {dimension_numbers = #tpu.dot_dimension_numbers<[1], [0], [0], [1], [0, 0, 1, 1], [], []>} : vector<128x128xbf16>, vector<128x128xbf16>, vector<128x128xf32> -> vector<128x128xf32>
    %7 = arith.maximumf %3, %6 : vector<128x128xf32>
    %c2 = arith.constant 2 : index
    %c0_7 = arith.constant 0 : index
    %c0_8 = arith.constant 0 : index
    %8 = vector.load %arg1[%c2, %c0_7, %c0_8] : memref<4x128x128xbf16, #tpu.memory_space<vmem>>, vector<1x128x128xbf16>
    %9 = vector.shape_cast %8 : vector<1x128x128xbf16> to vector<128x128xbf16>
    %cst_9 = arith.constant dense<0.000000e+00> : vector<128x128xf32>
    %10 = tpu.matmul %9, %0, %cst_9 {dimension_numbers = #tpu.dot_dimension_numbers<[1], [0], [0], [1], [0, 0, 1, 1], [], []>} : vector<128x128xbf16>, vector<128x128xbf16>, vector<128x128xf32> -> vector<128x128xf32>
    %11 = arith.maximumf %7, %10 : vector<128x128xf32>
    %c3 = arith.constant 3 : index
    %c0_10 = arith.constant 0 : index
    %c0_11 = arith.constant 0 : index
    %12 = vector.load %arg1[%c3, %c0_10, %c0_11] : memref<4x128x128xbf16, #tpu.memory_space<vmem>>, vector<1x128x128xbf16>
    %13 = vector.shape_cast %12 : vector<1x128x128xbf16> to vector<128x128xbf16>
    %cst_12 = arith.constant dense<0.000000e+00> : vector<128x128xf32>
    %14 = tpu.matmul %13, %0, %cst_12 {dimension_numbers = #tpu.dot_dimension_numbers<[1], [0], [0], [1], [0, 0, 1, 1], [], []>} : vector<128x128xbf16>, vector<128x128xbf16>, vector<128x128xf32> -> vector<128x128xf32>
    %15 = arith.maximumf %11, %14 : vector<128x128xf32>
    %c0_13 = arith.constant 0 : index
    %c0_14 = arith.constant 0 : index
    %16 = vector.load %arg3[%c0_13, %c0_14] : memref<1x128xf32, #tpu.memory_space<vmem>>, vector<1x128xf32>
    %17 = vector.broadcast %16 : vector<1x128xf32> to vector<128x128xf32>
    %18 = arith.addf %15, %17 : vector<128x128xf32>
    %cst_15 = arith.constant 0.000000e+00 : f32
    %19 = vector.broadcast %cst_15 : f32 to vector<128x128xf32>
    %20 = arith.maximumf %18, %19 : vector<128x128xf32>
    %21 = vector.extract_strided_slice %20 {offsets = [0, 0], sizes = [128, 8], strides = [1, 1]} : vector<128x128xf32> to vector<128x8xf32>
    %22 = arith.truncf %21 : vector<128x8xf32> to vector<128x8xbf16>
    %c0_16 = arith.constant 0 : index
    %c0_17 = arith.constant 0 : index
    %23 = vector.load %arg4[%c0_16, %c0_17] : memref<128x8xbf16, #tpu.memory_space<vmem>>, vector<128x8xbf16>
    tpu.vector_store %arg4[%c0_16, %c0_17], %22 {strides = array<i32>} : memref<128x8xbf16, #tpu.memory_space<vmem>>, vector<128x8xbf16>,
    return
  }
  func.func @transform_0(%arg0: i32) -> (i32, i32, i32) {
    %c0_i32 = arith.constant 0 : i32
    %c0_i32_0 = arith.constant 0 : i32
    %c0_i32_1 = arith.constant 0 : i32
    return %c0_i32, %arg0, %c0_i32_0 : i32, i32, i32
  }
  func.func @transform_1(%arg0: i32) -> (i32, i32) {
    %c0_i32 = arith.constant 0 : i32
    %c0_i32_0 = arith.constant 0 : i32
    %c0_i32_1 = arith.constant 0 : i32
    return %c0_i32, %c0_i32_0 : i32, i32
  }
  func.func @transform_2(%arg0: i32) -> (i32, i32) {
    %c0_i32 = arith.constant 0 : i32
    %c0_i32_0 = arith.constant 0 : i32
    %c0_i32_1 = arith.constant 0 : i32
    return %c0_i32, %c0_i32_0 : i32, i32
  }
  func.func @transform_3(%arg0: i32) -> (i32, i32) {
    %c0_i32 = arith.constant 0 : i32
    %c0_i32_0 = arith.constant 0 : i32
    return %arg0, %c0_i32 : i32, i32
  }
}

module attributes {stable_mosaic.version = 11 : i64} {
  func.func @_fused_mlp_kernel(%arg0: i32, %arg1: memref<8x512xbf16, #tpu.memory_space<vmem>>, %arg2: memref<512x128xbf16, #tpu.memory_space<vmem>>, %arg3: memref<1x128xf32, #tpu.memory_space<vmem>>, %arg4: memref<128x128xbf16, #tpu.memory_space<vmem>>, %arg5: memref<1x128xf32, #tpu.memory_space<vmem>>, %arg6: memref<8x128xf32, #tpu.memory_space<vmem>>) attributes {dimension_semantics = [#tpu.dimension_semantics<arbitrary>], iteration_bounds = array<i64: 1>, scalar_prefetch = 0 : i64, scratch_operands = 0 : i64, tpu.core_type = #tpu.core_type<tc>, window_params = [{pipeline_mode = #tpu.pipeline_mode<synchronous>, transform_indices = @transform_0, window_bounds = array<i64: 8, 512>}, {pipeline_mode = #tpu.pipeline_mode<synchronous>, transform_indices = @transform_1, window_bounds = array<i64: 512, 128>}, {pipeline_mode = #tpu.pipeline_mode<synchronous>, transform_indices = @transform_2, window_bounds = array<i64: 1, 128>}, {pipeline_mode = #tpu.pipeline_mode<synchronous>, transform_indices = @transform_3, window_bounds = array<i64: 128, 128>}, {pipeline_mode = #tpu.pipeline_mode<synchronous>, transform_indices = @transform_4, window_bounds = array<i64: 1, 128>}, {pipeline_mode = #tpu.pipeline_mode<synchronous>, transform_indices = @transform_5, window_bounds = array<i64: 8, 128>}]} {
    %c0 = arith.constant 0 : index
    %c0_0 = arith.constant 0 : index
    %0 = vector.load %arg1[%c0, %c0_0] : memref<8x512xbf16, #tpu.memory_space<vmem>>, vector<8x512xbf16>
    %c0_1 = arith.constant 0 : index
    %c0_2 = arith.constant 0 : index
    %1 = vector.load %arg2[%c0_1, %c0_2] : memref<512x128xbf16, #tpu.memory_space<vmem>>, vector<512x128xbf16>
    %cst = arith.constant dense<0.000000e+00> : vector<8x128xf32>
    %2 = tpu.matmul %0, %1, %cst {dimension_numbers = #tpu.dot_dimension_numbers<[1], [0], [0], [1], [0, 0, 1, 1], [], []>} : vector<8x512xbf16>, vector<512x128xbf16>, vector<8x128xf32> -> vector<8x128xf32>
    %c0_3 = arith.constant 0 : index
    %c0_4 = arith.constant 0 : index
    %3 = vector.load %arg3[%c0_3, %c0_4] : memref<1x128xf32, #tpu.memory_space<vmem>>, vector<1x128xf32>
    %4 = vector.broadcast %3 : vector<1x128xf32> to vector<8x128xf32>
    %5 = arith.addf %2, %4 : vector<8x128xf32>
    %cst_5 = arith.constant 0.000000e+00 : f32
    %6 = vector.broadcast %cst_5 : f32 to vector<8x128xf32>
    %7 = arith.maximumf %5, %6 : vector<8x128xf32>
    %8 = arith.truncf %7 : vector<8x128xf32> to vector<8x128xbf16>
    %c0_6 = arith.constant 0 : index
    %c0_7 = arith.constant 0 : index
    %9 = vector.load %arg4[%c0_6, %c0_7] : memref<128x128xbf16, #tpu.memory_space<vmem>>, vector<128x128xbf16>
    %cst_8 = arith.constant dense<0.000000e+00> : vector<8x128xf32>
    %10 = tpu.matmul %8, %9, %cst_8 {dimension_numbers = #tpu.dot_dimension_numbers<[1], [0], [0], [1], [0, 0, 1, 1], [], []>} : vector<8x128xbf16>, vector<128x128xbf16>, vector<8x128xf32> -> vector<8x128xf32>
    %c0_9 = arith.constant 0 : index
    %c0_10 = arith.constant 0 : index
    %11 = vector.load %arg5[%c0_9, %c0_10] : memref<1x128xf32, #tpu.memory_space<vmem>>, vector<1x128xf32>
    %12 = vector.broadcast %11 : vector<1x128xf32> to vector<8x128xf32>
    %13 = arith.addf %10, %12 : vector<8x128xf32>
    %c0_11 = arith.constant 0 : index
    %c0_12 = arith.constant 0 : index
    %14 = vector.load %arg6[%c0_11, %c0_12] : memref<8x128xf32, #tpu.memory_space<vmem>>, vector<8x128xf32>
    tpu.vector_store %arg6[%c0_11, %c0_12], %13 {strides = array<i32>} : memref<8x128xf32, #tpu.memory_space<vmem>>, vector<8x128xf32>,
    return
  }
  func.func @transform_0(%arg0: i32) -> (i32, i32) {
    %c0_i32 = arith.constant 0 : i32
    %c0_i32_0 = arith.constant 0 : i32
    %c0_i32_1 = arith.constant 0 : i32
    return %c0_i32, %c0_i32_0 : i32, i32
  }
  func.func @transform_1(%arg0: i32) -> (i32, i32) {
    %c0_i32 = arith.constant 0 : i32
    %c0_i32_0 = arith.constant 0 : i32
    %c0_i32_1 = arith.constant 0 : i32
    return %c0_i32, %c0_i32_0 : i32, i32
  }
  func.func @transform_2(%arg0: i32) -> (i32, i32) {
    %c0_i32 = arith.constant 0 : i32
    %c0_i32_0 = arith.constant 0 : i32
    %c0_i32_1 = arith.constant 0 : i32
    return %c0_i32, %c0_i32_0 : i32, i32
  }
  func.func @transform_3(%arg0: i32) -> (i32, i32) {
    %c0_i32 = arith.constant 0 : i32
    %c0_i32_0 = arith.constant 0 : i32
    %c0_i32_1 = arith.constant 0 : i32
    return %c0_i32, %c0_i32_0 : i32, i32
  }
  func.func @transform_4(%arg0: i32) -> (i32, i32) {
    %c0_i32 = arith.constant 0 : i32
    %c0_i32_0 = arith.constant 0 : i32
    %c0_i32_1 = arith.constant 0 : i32
    return %c0_i32, %c0_i32_0 : i32, i32
  }
  func.func @transform_5(%arg0: i32) -> (i32, i32) {
    %c0_i32 = arith.constant 0 : i32
    %c0_i32_0 = arith.constant 0 : i32
    %c0_i32_1 = arith.constant 0 : i32
    return %c0_i32, %c0_i32_0 : i32, i32
  }
}

</mosaic_0001>

<bundles_post_ra>
// kernel: convnet_forward.2
= control target key start
LH: loop header
LB: loop body
LE: loop exit
PB: predicated region body
PF: predicated region fallthrough
CT: control target
= control target key end

     0   :  { %vm877_vm0 = vcmask 60416   ;;  %s1592_s1 = inlined_call_operand.vmem [shape: bf16[128,128], index: 1, kind: input, shape index: {}]   ;;  %s1593_s0 = inlined_call_operand.vmem [shape: bf16[4,128,128], index: 0, kind: input, shape index: {}]   ;;  %s1594_s2 = inlined_call_operand.vmem [shape: f32[1,128], index: 2, kind: input, shape index: {}]   ;;  %s1595_s3 = inlined_call_operand.vmem [shape: bf16[128,8], index: 3, kind: output, shape index: {}]  }
   0x1   :  { %v1211_v0 = vld [vmem:[%s1592_s1 + $0x38] sm:$0xff]   ;;  %v1212_v1 = vld [vmem:[%s1592_s1 + $0x30] sm:$0xff]   ;;  %v1213_v2 = vld [vmem:[%s1592_s1 + $0x28] sm:$0xff]  }
   0x2   :  { %1083 = vmatprep.subr.bf16.mxu0 %v1211_v0  ;;  %1115 = vmatprep.subr.bf16.mxu1 %v1211_v0  ;;  %v1283_v3 = vld [vmem:[%s1592_s1 + $0x20] sm:$0xff]   ;;  %v1296_v6 = vld [vmem:[%s1592_s1 + $0x18] sm:$0xff]   ;;  %v1305_v7 = vld [vmem:[%s1592_s1 + $0x10] sm:$0xff]  }
   0x3   :  { %1084 = vmatpush3.bf16.msra.mxu0 %v1211_v0  ;;  %1116 = vmatpush3.bf16.msra.mxu1 %v1211_v0  ;;  %v1219_v4 = vld [vmem:[%s1593_s0] sm:$0xff]   ;;  %v1314_v8 = vld [vmem:[%s1592_s1 + $0x8] sm:$0xff]   ;;  %v1223_v12 = vld [vmem:[%s1593_s0 + $0x10] sm:$0xff]  }
   0x4   :  { %1085 = vmatprep.subr.bf16.mxu0 %v1212_v1  ;;  %1117 = vmatprep.subr.bf16.mxu1 %v1212_v1  ;;  %v1220_v5 = vld [vmem:[%s1593_s0 + $0x40] sm:$0xff]   ;;  %v1221_v10 = vld [vmem:[%s1593_s0 + $0x8] sm:$0xff]   ;;  %v1224_v13 = vld [vmem:[%s1593_s0 + $0x50] sm:$0xff]  }
   0x5   :  { %1099 = vmatprep.mubr.bf16.mxu0 %v1219_v4  ;;  %1131 = vmatprep.mubr.bf16.mxu1 %v1220_v5  ;;  %v1323_v9 = vld [vmem:[%s1592_s1] sm:$0xff]   ;;  %v1222_v11 = vld [vmem:[%s1593_s0 + $0x48] sm:$0xff]   ;;  %v1225_v14 = vld [vmem:[%s1593_s0 + $0x18] sm:$0xff]  }
   0x6   :  { %v1226_v15 = vld [vmem:[%s1593_s0 + $0x58] sm:$0xff]   ;;  %v1227_v16 = vld [vmem:[%s1593_s0 + $0x20] sm:$0xff]   ;;  %v1229_v18 = vld [vmem:[%s1593_s0 + $0x28] sm:$0xff]  }
   0x7   :  { %1086 = vmatpush3.bf16.msra.mxu0 %v1212_v1  ;;  %1118 = vmatpush3.bf16.msra.mxu1 %v1212_v1  ;;  %v1228_v17 = vld [vmem:[%s1593_s0 + $0x60] sm:$0xff]   ;;  %v1230_v19 = vld [vmem:[%s1593_s0 + $0x68] sm:$0xff]   ;;  %v1231_v20 = vld [vmem:[%s1593_s0 + $0x30] sm:$0xff]  }
   0x8   :  { %1087 = vmatprep.subr.bf16.mxu0 %v1213_v2  ;;  %1119 = vmatprep.subr.bf16.mxu1 %v1213_v2  ;;  %v1232_v21 = vld [vmem:[%s1593_s0 + $0x70] sm:$0xff]   ;;  %v1233_v22 = vld [vmem:[%s1593_s0 + $0x38] sm:$0xff]   ;;  %v1235_v24 = vld [vmem:[%s1593_s0 + $0x80] sm:$0xff]  }
   0x9   :  { %v1234_v23 = vld [vmem:[%s1593_s0 + $0x78] sm:$0xff]   ;;  %v1236_v25 = vld [vmem:[%s1593_s0 + $0xc0] sm:$0xff]   ;;  %v1237_v26 = vld [vmem:[%s1593_s0 + $0x88] sm:$0xff]  }
   0xa   :  { %v1238_v27 = vld [vmem:[%s1593_s0 + $0xc8] sm:$0xff]   ;;  %v1239_v28 = vld [vmem:[%s1593_s0 + $0x90] sm:$0xff]   ;;  %v1241_v30 = vld [vmem:[%s1593_s0 + $0x98] sm:$0xff]  }
   0xb   :  { %1088 = vmatpush3.bf16.msra.mxu0 %v1213_v2  ;;  %1120 = vmatpush3.bf16.msra.mxu1 %v1213_v2  ;;  %v1240_v29 = vld [vmem:[%s1593_s0 + $0xd0] sm:$0xff]   ;;  %v1242_v31 = vld [vmem:[%s1593_s0 + $0xd8] sm:$0xff]   ;;  %v1243_v32 = vld [vmem:[%s1593_s0 + $0xa0] sm:$0xff]  }
   0xc   :  { %1089 = vmatprep.subr.bf16.mxu0 %v1283_v3  ;;  %1121 = vmatprep.subr.bf16.mxu1 %v1283_v3  ;;  %v1244_v33 = vld [vmem:[%s1593_s0 + $0xe0] sm:$0xff]   ;;  %v1245_v34 = vld [vmem:[%s1593_s0 + $0xa8] sm:$0xff]   ;;  %v1247_v36 = vld [vmem:[%s1593_s0 + $0xb0] sm:$0xff]  }
   0xd   :  { %v1246_v35 = vld [vmem:[%s1593_s0 + $0xe8] sm:$0xff]   ;;  %v1248_v37 = vld [vmem:[%s1593_s0 + $0xf0] sm:$0xff]   ;;  %v1249_v38 = vld [vmem:[%s1593_s0 + $0xb8] sm:$0xff]  }
   0xe   :  { %v1250_v39 = vld [vmem:[%s1593_s0 + $0xf8] sm:$0xff]  }
   0xf   :  { %1090 = vmatpush3.bf16.msra.mxu0 %v1283_v3  ;;  %1122 = vmatpush3.bf16.msra.mxu1 %v1283_v3 }
  0x10   :  { %1091 = vmatprep.subr.bf16.mxu0 %v1296_v6  ;;  %1123 = vmatprep.subr.bf16.mxu1 %v1296_v6 }
  0x13   :  { %1092 = vmatpush3.bf16.msra.mxu0 %v1296_v6  ;;  %1124 = vmatpush3.bf16.msra.mxu1 %v1296_v6 }
  0x14   :  { %1093 = vmatprep.subr.bf16.mxu0 %v1305_v7  ;;  %1125 = vmatprep.subr.bf16.mxu1 %v1305_v7 }
  0x17   :  { %1094 = vmatpush3.bf16.msra.mxu0 %v1305_v7  ;;  %1126 = vmatpush3.bf16.msra.mxu1 %v1305_v7 }
  0x18   :  { %1095 = vmatprep.subr.bf16.mxu0 %v1314_v8  ;;  %1127 = vmatprep.subr.bf16.mxu1 %v1314_v8 }
  0x1b   :  { %1096 = vmatpush3.bf16.msra.mxu0 %v1314_v8  ;;  %1128 = vmatpush3.bf16.msra.mxu1 %v1314_v8 }
  0x1c   :  { %1097 = vmatprep.subr.bf16.mxu0 %v1323_v9  ;;  %1129 = vmatprep.subr.bf16.mxu1 %v1323_v9 }
  0x1f   :  { %1098 = vmatpush3.bf16.msra.mxu0 %v1323_v9  ;;  %1130 = vmatpush3.bf16.msra.mxu1 %v1323_v9 }
  0x20   :  { %1147 = vmatprep.subr.bf16.mxu0 %v1211_v0  ;;  %1179 = vmatprep.subr.bf16.mxu1 %v1211_v0 }
  0x22   :  { %1100 = vmatmul.mubr.bf16.vlgmr.msra.gmra.mxu0 %v1221_v10  ;;  %1132 = vmatmul.mubr.bf16.vlgmr.msra.gmra.mxu1 %v1222_v11 }
  0x23   :  { %1148 = vmatpush3.bf16.msra.mxu0 %v1211_v0  ;;  %1180 = vmatpush3.bf16.msra.mxu1 %v1211_v0 }
  0x24   :  { %1149 = vmatprep.subr.bf16.mxu0 %v1212_v1  ;;  %1181 = vmatprep.subr.bf16.mxu1 %v1212_v1 }
  0x25   :  { %1103 = vmatprep.mubr.bf16.mxu0 %v1223_v12  ;;  %1135 = vmatprep.mubr.bf16.mxu1 %v1224_v13  ;;  %v1488_v13 = vld [vmem:[%s1594_s2] ss:$0 sm:$0xff] }
  0x27   :  { %1150 = vmatpush3.bf16.msra.mxu0 %v1212_v1  ;;  %1182 = vmatpush3.bf16.msra.mxu1 %v1212_v1 }
  0x28   :  { %1151 = vmatprep.subr.bf16.mxu0 %v1213_v2  ;;  %1183 = vmatprep.subr.bf16.mxu1 %v1213_v2 }
  0x2a   :  { %1104 = vmatmul.mubr.bf16.gmra.mxu0 %v1225_v14  ;;  %1136 = vmatmul.mubr.bf16.gmra.mxu1 %v1226_v15 }
  0x2b   :  { %1152 = vmatpush3.bf16.msra.mxu0 %v1213_v2  ;;  %1184 = vmatpush3.bf16.msra.mxu1 %v1213_v2 }
  0x2c   :  { %1153 = vmatprep.subr.bf16.mxu0 %v1283_v3  ;;  %1185 = vmatprep.subr.bf16.mxu1 %v1283_v3 }
  0x2d   :  { %1107 = vmatprep.mubr.bf16.mxu0 %v1227_v16  ;;  %1139 = vmatprep.mubr.bf16.mxu1 %v1228_v17 }
  0x2f   :  { %1154 = vmatpush3.bf16.msra.mxu0 %v1283_v3  ;;  %1186 = vmatpush3.bf16.msra.mxu1 %v1283_v3 }
  0x30   :  { %1155 = vmatprep.subr.bf16.mxu0 %v1296_v6  ;;  %1187 = vmatprep.subr.bf16.mxu1 %v1296_v6 }
  0x32   :  { %1108 = vmatmul.mubr.bf16.gmra.mxu0 %v1229_v18  ;;  %1140 = vmatmul.mubr.bf16.gmra.mxu1 %v1230_v19 }
  0x33   :  { %1156 = vmatpush3.bf16.msra.mxu0 %v1296_v6  ;;  %1188 = vmatpush3.bf16.msra.mxu1 %v1296_v6 }
  0x34   :  { %1157 = vmatprep.subr.bf16.mxu0 %v1305_v7  ;;  %1189 = vmatprep.subr.bf16.mxu1 %v1305_v7 }
  0x35   :  { %1111 = vmatprep.mubr.bf16.mxu0 %v1231_v20  ;;  %1143 = vmatprep.mubr.bf16.mxu1 %v1232_v21 }
  0x37   :  { %1158 = vmatpush3.bf16.msra.mxu0 %v1305_v7  ;;  %1190 = vmatpush3.bf16.msra.mxu1 %v1305_v7 }
  0x38   :  { %1159 = vmatprep.subr.bf16.mxu0 %v1314_v8  ;;  %1191 = vmatprep.subr.bf16.mxu1 %v1314_v8 }
  0x3a   :  { %1112 = vmatmul.mubr.bf16.gmra.mxu0 %v1233_v22  ;;  %1144 = vmatmul.mubr.bf16.gmra.mxu1 %v1234_v23 }
  0x3b   :  { %1160 = vmatpush3.bf16.msra.mxu0 %v1314_v8  ;;  %1192 = vmatpush3.bf16.msra.mxu1 %v1314_v8 }
  0x3c   :  { %1161 = vmatprep.subr.bf16.mxu0 %v1323_v9  ;;  %1193 = vmatprep.subr.bf16.mxu1 %v1323_v9 }
  0x3d   :  { %1163 = vmatprep.mubr.bf16.mxu0 %v1235_v24  ;;  %1195 = vmatprep.mubr.bf16.mxu1 %v1236_v25 }
  0x3f   :  { %1162 = vmatpush3.bf16.msra.mxu0 %v1323_v9  ;;  %1194 = vmatpush3.bf16.msra.mxu1 %v1323_v9 }
  0x42   :  { %1164 = vmatmul.mubr.bf16.vlgmr.msra.gmra.mxu0 %v1237_v26  ;;  %1196 = vmatmul.mubr.bf16.vlgmr.msra.gmra.mxu1 %v1238_v27 }
  0x43   :  { %1167 = vmatprep.mubr.bf16.mxu0 %v1239_v28  ;;  %1199 = vmatprep.mubr.bf16.mxu1 %v1240_v29 }
  0x4a   :  { %1168 = vmatmul.mubr.bf16.gmra.mxu0 %v1241_v30  ;;  %1200 = vmatmul.mubr.bf16.gmra.mxu1 %v1242_v31 }
  0x4b   :  { %1171 = vmatprep.mubr.bf16.mxu0 %v1243_v32  ;;  %1203 = vmatprep.mubr.bf16.mxu1 %v1244_v33 }
  0x52   :  { %1172 = vmatmul.mubr.bf16.gmra.mxu0 %v1245_v34  ;;  %1204 = vmatmul.mubr.bf16.gmra.mxu1 %v1246_v35 }
  0x53   :  { %1175 = vmatprep.mubr.bf16.mxu0 %v1247_v36  ;;  %1207 = vmatprep.mubr.bf16.mxu1 %v1248_v37 }
  0x5a   :  { %1176 = vmatmul.mubr.bf16.gmra.mxu0 %v1249_v38  ;;  %1208 = vmatmul.mubr.bf16.gmra.mxu1 %v1250_v39 }
  0xe2   :  { %v1101_v40 = vpop.f32.mrf.mxu0  ;;  %v1133_v41 = vpop.f32.mrf.mxu1 }
  0xe3   :  { %v404_v8 = vmax.f32 %v1101_v40, %v1133_v41 }
  0xe4   :  { %v177_v42 = vpop.f32.mrf.mxu0  ;;  %v339_v43 = vpop.f32.mrf.mxu1 }
  0xe5   :  { %v402_v11 = vmax.f32 %v177_v42, %v339_v43 }
  0xe6   :  { %v1102_v44 = vpop.f32.mrf.mxu0  ;;  %v1134_v45 = vpop.f32.mrf.mxu1 }
  0xe7   :  { %v405_v16 = vmax.f32 %v1102_v44, %v1134_v45 }
  0xe8   :  { %v180_v46 = vpop.f32.mrf.mxu0  ;;  %v342_v47 = vpop.f32.mrf.mxu1 }
  0xe9   :  { %v403_v21 = vmax.f32 %v180_v46, %v342_v47 }
  0xea   :  { %v1105_v48 = vpop.f32.mrf.mxu0  ;;  %v1137_v49 = vpop.f32.mrf.mxu1 }
  0xeb   :  { %v408_v31 = vmax.f32 %v1105_v48, %v1137_v49 }
  0xec   :  { %v1441_v50 = vpop.f32.mrf.mxu0  ;;  %v1443_v51 = vpop.f32.mrf.mxu1 }
  0xed   :  { %v406_v32 = vmax.f32 %v1441_v50, %v1443_v51 }
  0xee   :  { %v1445_v52 = vpop.f32.mrf.mxu0  ;;  %v1447_v53 = vpop.f32.mrf.mxu1 }
  0xef   :  { %v409_v39 = vmax.f32 %v1445_v52, %v1447_v53 }
  0xf0   :  { %v1449_v54 = vpop.f32.mrf.mxu0  ;;  %v1451_v55 = vpop.f32.mrf.mxu1 }
  0xf1   :  { %v407_v47 = vmax.f32 %v1449_v54, %v1451_v55 }
  0xf2   :  { %v1453_v56 = vpop.f32.mrf.mxu0  ;;  %v1455_v57 = vpop.f32.mrf.mxu1 }
  0xf4   :  { %v1457_v58 = vpop.f32.mrf.mxu0  ;;  %v1459_v59 = vpop.f32.mrf.mxu1 }
  0xf6   :  { %v1461_v60 = vpop.f32.mrf.mxu0  ;;  %v1463_v61 = vpop.f32.mrf.mxu1 }
  0xf8   :  { %v1465_v62 = vpop.f32.mrf.mxu0  ;;  %v1467_v63 = vpop.f32.mrf.mxu1 }
  0xfa   :  { %v1469_v0 = vpop.f32.mrf.mxu0  ;;  %v1471_v1 = vpop.f32.mrf.mxu1 }
  0xfc   :  { %v1473_v2 = vpop.f32.mrf.mxu0  ;;  %v1475_v3 = vpop.f32.mrf.mxu1 }
  0xfe   :  { %v1477_v4 = vpop.f32.mrf.mxu0  ;;  %v1479_v5 = vpop.f32.mrf.mxu1 }
 0x100   :  { %v1481_v6 = vpop.f32.mrf.mxu0  ;;  %v1483_v7 = vpop.f32.mrf.mxu1 }
 0x102   :  { %v1165_v9 = vpop.f32.mrf.mxu0  ;;  %v1197_v10 = vpop.f32.mrf.mxu1 }
 0x103   :  { %v582_v12 = vmax.f32 %v404_v8, %v1165_v9  ;;  %v412_v9 = vmax.f32 %v1453_v56, %v1455_v57 }
 0x104   :  { %v517_v14 = vpop.f32.mrf.mxu0  ;;  %v695_v15 = vpop.f32.mrf.mxu1 }
 0x105   :  { %v760_v17 = vmax.f32 %v582_v12, %v1197_v10  ;;  %v580_v18 = vmax.f32 %v402_v11, %v517_v14 }
 0x106   :  { %v1166_v19 = vpop.f32.mrf.mxu0  ;;  %v1198_v20 = vpop.f32.mrf.mxu1 }
 0x107   :  { %v783_v22 = vadd.f32 %v1488_v13, %v760_v17  ;;  %v758_v23 = vmax.f32 %v580_v18, %v695_v15  ;;  %v583_v24 = vmax.f32 %v405_v16, %v1166_v19 }
 0x108   :  { %v520_v25 = vpop.f32.mrf.mxu0  ;;  %v698_v26 = vpop.f32.mrf.mxu1 }
 0x109   :  { %v799_v27 = vmax.f32 %v783_v22, 0.0  ;;  %v781_v28 = vadd.f32 %v1488_v13, %v758_v23  ;;  %v761_v29 = vmax.f32 %v583_v24, %v1198_v20  ;;  %v581_v30 = vmax.f32 %v403_v21, %v520_v25 }
 0x10a   :  { %v1169_v33 = vpop.f32.mrf.mxu0  ;;  %v1201_v34 = vpop.f32.mrf.mxu1  ;;  %v410_v21 = vmax.f32 %v1457_v58, %v1459_v59  ;;  %v413_v22 = vmax.f32 %v1461_v60, %v1463_v61 }
 0x10b   :  { %v1005_v35 = vpack.c.bf16 %v799_v27, %v799_v27  ;;  %v797_v36 = vmax.f32 %v781_v28, 0.0  ;;  %v784_v37 = vadd.f32 %v1488_v13, %v761_v29  ;;  %v759_v38 = vmax.f32 %v581_v30, %v698_v26 }
 0x10c   :  { %v586_v40 = vmax.f32 %v408_v31, %v1169_v33  ;;  %v533_v41 = vpop.f32.mrf.mxu0  ;;  %v711_v42 = vpop.f32.mrf.mxu1  ;;  %v411_v30 = vmax.f32 %v1465_v62, %v1467_v63  ;;  %v416_v62 = vmax.f32 %v1469_v0, %v1471_v1 }
 0x10d   :  { %880 = vst.msk [vmem:[%s1595_s3 + $0x8] sm:$0xf] %vm877_vm0, %v1005_v35  ;;  %v1003_v43 = vpack.c.bf16 %v797_v36, %v797_v36  ;;  %v800_v44 = vmax.f32 %v784_v37, 0.0  ;;  %v782_v45 = vadd.f32 %v1488_v13, %v759_v38  ;;  %v584_v46 = vmax.f32 %v406_v32, %v533_v41 }
 0x10e   :  { %v764_v48 = vmax.f32 %v586_v40, %v1201_v34  ;;  %v1170_v49 = vpop.f32.mrf.mxu0  ;;  %v1202_v50 = vpop.f32.mrf.mxu1  ;;  %v414_v40 = vmax.f32 %v1473_v2, %v1475_v3 }
 0x10f   :  { %878 = vst.msk [vmem:[%s1595_s3] sm:$0xf] %vm877_vm0, %v1003_v43  ;;  %v1006_v51 = vpack.c.bf16 %v800_v44, %v800_v44  ;;  %v798_v52 = vmax.f32 %v782_v45, 0.0  ;;  %v762_v53 = vmax.f32 %v584_v46, %v711_v42  ;;  %v587_v8 = vmax.f32 %v409_v39, %v1170_v49 }
 0x110   :  { %v787_v10 = vadd.f32 %v1488_v13, %v764_v48  ;;  %v536_v11 = vpop.f32.mrf.mxu0  ;;  %v714_v12 = vpop.f32.mrf.mxu1 }
 0x111   :  { %881 = vst.msk [vmem:[%s1595_s3 + $0xc] sm:$0xf] %vm877_vm0, %v1006_v51  ;;  %v1004_v54 = vpack.c.bf16 %v798_v52, %v798_v52  ;;  %v785_v55 = vadd.f32 %v1488_v13, %v762_v53  ;;  %v765_v14 = vmax.f32 %v587_v8, %v1202_v50  ;;  %v585_v15 = vmax.f32 %v407_v47, %v536_v11 }
 0x112   :  { %v803_v16 = vmax.f32 %v787_v10, 0.0  ;;  %v1173_v17 = vpop.f32.mrf.mxu0  ;;  %v1205_v18 = vpop.f32.mrf.mxu1  ;;  %v417_v51 = vmax.f32 %v1477_v4, %v1479_v5  ;;  %v415_v52 = vmax.f32 %v1481_v6, %v1483_v7 }
 0x113   :  { %879 = vst.msk [vmem:[%s1595_s3 + $0x4] sm:$0xf] %vm877_vm0, %v1004_v54  ;;  %v801_v56 = vmax.f32 %v785_v55, 0.0  ;;  %v788_v57 = vadd.f32 %v1488_v13, %v765_v14  ;;  %v763_v19 = vmax.f32 %v585_v15, %v714_v12  ;;  %v590_v20 = vmax.f32 %v412_v9, %v1173_v17 }
 0x114   :  { %v1009_v23 = vpack.c.bf16 %v803_v16, %v803_v16  ;;  %v549_v24 = vpop.f32.mrf.mxu0  ;;  %v727_v25 = vpop.f32.mrf.mxu1 }
 0x115   :  { %v1007_v26 = vpack.c.bf16 %v801_v56, %v801_v56  ;;  %v804_v27 = vmax.f32 %v788_v57, 0.0  ;;  %v786_v28 = vadd.f32 %v1488_v13, %v763_v19  ;;  %v768_v29 = vmax.f32 %v590_v20, %v1205_v18 }
 0x116   :  { %884 = vst.msk [vmem:[%s1595_s3 + $0x18] sm:$0xf] %vm877_vm0, %v1009_v23  ;;  %v588_v58 = vmax.f32 %v410_v21, %v549_v24  ;;  %v1174_v59 = vpop.f32.mrf.mxu0  ;;  %v1206_v31 = vpop.f32.mrf.mxu1 }
 0x117   :  { %882 = vst.msk [vmem:[%s1595_s3 + $0x10] sm:$0xf] %vm877_vm0, %v1007_v26  ;;  %v1010_v60 = vpack.c.bf16 %v804_v27, %v804_v27  ;;  %v802_v61 = vmax.f32 %v786_v28, 0.0  ;;  %v791_v32 = vadd.f32 %v1488_v13, %v768_v29  ;;  %v591_v33 = vmax.f32 %v413_v22, %v1174_v59 }
 0x118   :  { %v766_v63 = vmax.f32 %v588_v58, %v727_v25  ;;  %v552_v34 = vpop.f32.mrf.mxu0  ;;  %v730_v35 = vpop.f32.mrf.mxu1 }
 0x119   :  { %885 = vst.msk [vmem:[%s1595_s3 + $0x1c] sm:$0xf] %vm877_vm0, %v1010_v60  ;;  %v1008_v36 = vpack.c.bf16 %v802_v61, %v802_v61  ;;  %v807_v37 = vmax.f32 %v791_v32, 0.0  ;;  %v769_v38 = vmax.f32 %v591_v33, %v1206_v31  ;;  %v589_v39 = vmax.f32 %v411_v30, %v552_v34 }
 0x11a   :  { %v789_v41 = vadd.f32 %v1488_v13, %v766_v63  ;;  %v1177_v42 = vpop.f32.mrf.mxu0  ;;  %v1209_v43 = vpop.f32.mrf.mxu1 }
 0x11b   :  { %883 = vst.msk [vmem:[%s1595_s3 + $0x14] sm:$0xf] %vm877_vm0, %v1008_v36  ;;  %v1013_v0 = vpack.c.bf16 %v807_v37, %v807_v37  ;;  %v792_v1 = vadd.f32 %v1488_v13, %v769_v38  ;;  %v767_v44 = vmax.f32 %v589_v39, %v730_v35  ;;  %v594_v45 = vmax.f32 %v416_v62, %v1177_v42 }
 0x11c   :  { %v805_v46 = vmax.f32 %v789_v41, 0.0  ;;  %v565_v47 = vpop.f32.mrf.mxu0  ;;  %v743_v48 = vpop.f32.mrf.mxu1 }
 0x11d   :  { %888 = vst.msk [vmem:[%s1595_s3 + $0x28] sm:$0xf] %vm877_vm0, %v1013_v0  ;;  %v808_v2 = vmax.f32 %v792_v1, 0.0  ;;  %v790_v3 = vadd.f32 %v1488_v13, %v767_v44  ;;  %v772_v49 = vmax.f32 %v594_v45, %v1209_v43  ;;  %v592_v50 = vmax.f32 %v414_v40, %v565_v47 }
 0x11e   :  { %v1011_v53 = vpack.c.bf16 %v805_v46, %v805_v46  ;;  %v1178_v8 = vpop.f32.mrf.mxu0  ;;  %v1210_v9 = vpop.f32.mrf.mxu1 }
 0x11f   :  { %v1014_v10 = vpack.c.bf16 %v808_v2, %v808_v2  ;;  %v806_v11 = vmax.f32 %v790_v3, 0.0  ;;  %v795_v12 = vadd.f32 %v1488_v13, %v772_v49  ;;  %v770_v54 = vmax.f32 %v592_v50, %v743_v48 }
 0x120   :  { %886 = vst.msk [vmem:[%s1595_s3 + $0x20] sm:$0xf] %vm877_vm0, %v1011_v53  ;;  %v595_v55 = vmax.f32 %v417_v51, %v1178_v8  ;;  %v568_v14 = vpop.f32.mrf.mxu0  ;;  %v746_v16 = vpop.f32.mrf.mxu1 }
 0x121   :  { %889 = vst.msk [vmem:[%s1595_s3 + $0x2c] sm:$0xf] %vm877_vm0, %v1014_v10  ;;  %v1012_v4 = vpack.c.bf16 %v806_v11, %v806_v11  ;;  %v811_v5 = vmax.f32 %v795_v12, 0.0  ;;  %v793_v6 = vadd.f32 %v1488_v13, %v770_v54  ;;  %v593_v7 = vmax.f32 %v415_v52, %v568_v14 }
 0x122   :  { %v773_v15 = vmax.f32 %v595_v55, %v1210_v9 }
 0x123   :  { %887 = vst.msk [vmem:[%s1595_s3 + $0x24] sm:$0xf] %vm877_vm0, %v1012_v4  ;;  %v1017_v17 = vpack.c.bf16 %v811_v5, %v811_v5  ;;  %v809_v18 = vmax.f32 %v793_v6, 0.0  ;;  %v771_v56 = vmax.f32 %v593_v7, %v746_v16 }
 0x124   :  { %v796_v57 = vadd.f32 %v1488_v13, %v773_v15 }
 0x125   :  { %892 = vst.msk [vmem:[%s1595_s3 + $0x38] sm:$0xf] %vm877_vm0, %v1017_v17  ;;  %v1015_v19 = vpack.c.bf16 %v809_v18, %v809_v18  ;;  %v794_v20 = vadd.f32 %v1488_v13, %v771_v56 }
 0x126   :  { %v812_v21 = vmax.f32 %v796_v57, 0.0 }
 0x127   :  { %890 = vst.msk [vmem:[%s1595_s3 + $0x30] sm:$0xf] %vm877_vm0, %v1015_v19  ;;  %v810_v22 = vmax.f32 %v794_v20, 0.0 }
 0x128   :  { %v1018_v23 = vpack.c.bf16 %v812_v21, %v812_v21 }
 0x129   :  { %v1016_v24 = vpack.c.bf16 %v810_v22, %v810_v22 }
 0x12a   :  { %893 = vst.msk [vmem:[%s1595_s3 + $0x3c] sm:$0xf] %vm877_vm0, %v1018_v23 }
 0x12b   :  { %891 = vst.msk [vmem:[%s1595_s3 + $0x34] sm:$0xf] %vm877_vm0, %v1016_v24 }

// kernel: convnet_forward.3
= control target key start
LH: loop header
LB: loop body
LE: loop exit
PB: predicated region body
PF: predicated region fallthrough
CT: control target
= control target key end

     0   :  { %v663_v39 = vmov 0.0   ;;  %vm664_vm0 = vmmov 0   ;;  %s830_s1 = inlined_call_operand.vmem [shape: bf16[512,128], index: 1, kind: input, shape index: {}]   ;;  %s831_s0 = inlined_call_operand.vmem [shape: bf16[8,512], index: 0, kind: input, shape index: {}]   ;;  %s832_s3 = inlined_call_operand.vmem [shape: bf16[128,128], index: 3, kind: input, shape index: {}]   ;;  %s833_s2 = inlined_call_operand.vmem [shape: f32[1,128], index: 2, kind: input, shape index: {}]   ;;  %s834_s4 = inlined_call_operand.vmem [shape: f32[1,128], index: 4, kind: input, shape index: {}]   ;;  %s835_s5 = inlined_call_operand.vmem [shape: f32[8,128], index: 5, kind: output, shape index: {}]  }
   0x1   :  { %v619_v0 = vld [vmem:[%s830_s1 + $0x78] sm:$0xff]   ;;  %v623_v4 = vld [vmem:[%s830_s1 + $0x70] sm:$0xff]   ;;  %v627_v8 = vld [vmem:[%s830_s1 + $0x68] sm:$0xff]  }
   0x2   :  { %v620_v1 = vld [vmem:[%s830_s1 + $0xf8] sm:$0xff]   ;;  %544 = vmatprep.subr.bf16.mxu0 %v619_v0  ;;  %v624_v5 = vld [vmem:[%s830_s1 + $0xf0] sm:$0xff]   ;;  %v628_v9 = vld [vmem:[%s830_s1 + $0xe8] sm:$0xff]  }
   0x3   :  { %v621_v2 = vld [vmem:[%s830_s1 + $0x38] sm:$0xff]   ;;  %566 = vmatprep.subr.bf16.mxu1 %v620_v1  ;;  %v625_v6 = vld [vmem:[%s830_s1 + $0x30] sm:$0xff]   ;;  %v629_v10 = vld [vmem:[%s830_s1 + $0x28] sm:$0xff]  }
   0x4   :  { %v622_v3 = vld [vmem:[%s830_s1 + $0xb8] sm:$0xff]   ;;  %545 = vmatpush3.bf16.msra.mxu0 %v621_v2  ;;  %v626_v7 = vld [vmem:[%s830_s1 + $0xb0] sm:$0xff]   ;;  %v630_v11 = vld [vmem:[%s830_s1 + $0xa8] sm:$0xff]  }
   0x5   :  { %567 = vmatpush3.bf16.msra.mxu1 %v622_v3  ;;  %546 = vmatprep.subr.bf16.mxu0 %v623_v4  ;;  %v631_v12 = vld [vmem:[%s830_s1 + $0x60] sm:$0xff]   ;;  %v635_v16 = vld [vmem:[%s830_s1 + $0x58] sm:$0xff]   ;;  %v639_v20 = vld [vmem:[%s830_s1 + $0x50] sm:$0xff]  }
   0x6   :  { %568 = vmatprep.subr.bf16.mxu1 %v624_v5  ;;  %v632_v13 = vld [vmem:[%s830_s1 + $0xe0] sm:$0xff]   ;;  %v636_v17 = vld [vmem:[%s830_s1 + $0xd8] sm:$0xff]   ;;  %v640_v21 = vld [vmem:[%s830_s1 + $0xd0] sm:$0xff]  }
   0x7   :  { %v633_v14 = vld [vmem:[%s830_s1 + $0x20] sm:$0xff]   ;;  %v637_v18 = vld [vmem:[%s830_s1 + $0x18] sm:$0xff]   ;;  %v641_v22 = vld [vmem:[%s830_s1 + $0x10] sm:$0xff]  }
   0x8   :  { %547 = vmatpush3.bf16.msra.mxu0 %v625_v6  ;;  %v634_v15 = vld [vmem:[%s830_s1 + $0xa0] sm:$0xff]   ;;  %v638_v19 = vld [vmem:[%s830_s1 + $0x98] sm:$0xff]   ;;  %v642_v23 = vld [vmem:[%s830_s1 + $0x90] sm:$0xff]  }
   0x9   :  { %569 = vmatpush3.bf16.msra.mxu1 %v626_v7  ;;  %548 = vmatprep.subr.bf16.mxu0 %v627_v8  ;;  %v643_v24 = vld [vmem:[%s830_s1 + $0x48] sm:$0xff]   ;;  %v647_v28 = vld [vmem:[%s830_s1 + $0x40] sm:$0xff]   ;;  %v655_v38 = vld [vmem:[%s832_s3 + $0x38] sm:$0xff]  }
   0xa   :  { %570 = vmatprep.subr.bf16.mxu1 %v628_v9  ;;  %v644_v25 = vld [vmem:[%s830_s1 + $0xc8] sm:$0xff]   ;;  %v648_v29 = vld [vmem:[%s830_s1 + $0xc0] sm:$0xff]   ;;  %v656_v40 = vld [vmem:[%s832_s3 + $0x30] sm:$0xff]  }
   0xb   :  { %v645_v26 = vld [vmem:[%s830_s1 + $0x8] sm:$0xff]   ;;  %v649_v30 = vld [vmem:[%s830_s1] sm:$0xff]   ;;  %v659_v43 = vld [vmem:[%s832_s3 + $0x18] sm:$0xff]  }
   0xc   :  { %549 = vmatpush3.bf16.msra.mxu0 %v629_v10  ;;  %v646_v27 = vld [vmem:[%s830_s1 + $0x88] sm:$0xff]   ;;  %v650_v31 = vld [vmem:[%s830_s1 + $0x80] sm:$0xff]   ;;  %v660_v44 = vld [vmem:[%s832_s3 + $0x10] sm:$0xff]  }
   0xd   :  { %571 = vmatpush3.bf16.msra.mxu1 %v630_v11  ;;  %550 = vmatprep.subr.bf16.mxu0 %v631_v12  ;;  %v21_v32 = vld [vmem:[%s831_s0] sm:$0xff]  ;;  %v22_v33 = vld [vmem:[%s831_s0 + $0x8] sm:$0xff] }
   0xe   :  { %572 = vmatprep.subr.bf16.mxu1 %v632_v13  ;;  %v499_v34 = vcombine.low %v21_v32, %v21_v32  ;;  %v500_v35 = vcombine.high %v21_v32, %v21_v32  ;;  %v501_v36 = vcombine.low %v22_v33, %v22_v33  ;;  %v502_v37 = vcombine.high %v22_v33, %v22_v33  ;;  %v657_v41 = vld [vmem:[%s832_s3 + $0x28] sm:$0xff]   ;;  %v658_v42 = vld [vmem:[%s832_s3 + $0x20] sm:$0xff]  }
   0xf   :  { %v661_v45 = vld [vmem:[%s832_s3 + $0x8] sm:$0xff]   ;;  %v662_v46 = vld [vmem:[%s832_s3] sm:$0xff]  }
  0x10   :  { %551 = vmatpush3.bf16.msra.mxu0 %v633_v14  ;;  %332 = vmatprep.mubr.bf16.mxu0 %v500_v35  ;;  %v498_v49 = vld [vmem:[%s833_s2] ss:$0 sm:$0xff] }
  0x11   :  { %573 = vmatpush3.bf16.msra.mxu1 %v634_v15  ;;  %552 = vmatprep.subr.bf16.mxu0 %v635_v16  ;;  %v535_v62 = vld [vmem:[%s834_s4] ss:$0 sm:$0xff] }
  0x12   :  { %574 = vmatprep.subr.bf16.mxu1 %v636_v17  ;;  %372 = vmatprep.mubr.bf16.mxu1 %v502_v37 }
  0x14   :  { %553 = vmatpush3.bf16.msra.mxu0 %v637_v18 }
  0x15   :  { %575 = vmatpush3.bf16.msra.mxu1 %v638_v19  ;;  %554 = vmatprep.subr.bf16.mxu0 %v639_v20 }
  0x16   :  { %576 = vmatprep.subr.bf16.mxu1 %v640_v21 }
  0x18   :  { %555 = vmatpush3.bf16.msra.mxu0 %v641_v22 }
  0x19   :  { %577 = vmatpush3.bf16.msra.mxu1 %v642_v23  ;;  %556 = vmatprep.subr.bf16.mxu0 %v643_v24 }
  0x1a   :  { %578 = vmatprep.subr.bf16.mxu1 %v644_v25 }
  0x1c   :  { %557 = vmatpush3.bf16.msra.mxu0 %v645_v26 }
  0x1d   :  { %579 = vmatpush3.bf16.msra.mxu1 %v646_v27  ;;  %558 = vmatprep.subr.bf16.mxu0 %v647_v28 }
  0x1e   :  { %580 = vmatprep.subr.bf16.mxu1 %v648_v29 }
  0x20   :  { %559 = vmatpush3.bf16.msra.mxu0 %v649_v30 }
  0x21   :  { %581 = vmatpush3.bf16.msra.mxu1 %v650_v31  ;;  %597 = vmatprep.subr.bf16.mxu0 %v663_v39 }
  0x23   :  { %333 = vmatmul.mubr.bf16.vlgmr.msra.gmra.mxu0 %v499_v34 }
  0x24   :  { %373 = vmatmul.mubr.bf16.vlgmr.msra.gmra.mxu1 %v501_v36  ;;  %598 = vmatpush3.bf16.msra.mxu0 %v655_v38 }
  0x25   :  { %599 = vmatprep.subr.bf16.mxu0 %v663_v39  ;;  %613 = vmatprep.mubr.msk.bf16.mxu0 %vm664_vm0, %v663_v39 }
  0x28   :  { %600 = vmatpush3.bf16.msra.mxu0 %v656_v40 }
  0x29   :  { %601 = vmatprep.subr.bf16.mxu0 %v663_v39 }
  0x2c   :  { %602 = vmatpush3.bf16.msra.mxu0 %v657_v41 }
  0x2d   :  { %603 = vmatprep.subr.bf16.mxu0 %v663_v39 }
  0x30   :  { %604 = vmatpush3.bf16.msra.mxu0 %v658_v42 }
  0x31   :  { %605 = vmatprep.subr.bf16.mxu0 %v663_v39 }
  0x34   :  { %606 = vmatpush3.bf16.msra.mxu0 %v659_v43 }
  0x35   :  { %607 = vmatprep.subr.bf16.mxu0 %v663_v39 }
  0x38   :  { %608 = vmatpush3.bf16.msra.mxu0 %v660_v44 }
  0x39   :  { %609 = vmatprep.subr.bf16.mxu0 %v663_v39 }
  0x3c   :  { %610 = vmatpush3.bf16.msra.mxu0 %v661_v45 }
  0x3d   :  { %611 = vmatprep.subr.bf16.mxu0 %v663_v39 }
  0x40   :  { %612 = vmatpush3.bf16.msra.mxu0 %v662_v46 }
  0xe3   :  { %v560_v47 = vpop.f32.mrf.mxu0 }
  0xe4   :  { %v582_v48 = vpop.f32.mrf.mxu1 }
  0xe5   :  { %v561_v50 = vpop.f32.mrf.mxu0 }
  0xe6   :  { %v583_v51 = vpop.f32.mrf.mxu1  ;;  %v562_v52 = vadd.f32 %v561_v50, %v560_v47 }
  0xe7   :  { %v563_v53 = vpop.f32.mrf.mxu0  ;;  %v584_v56 = vadd.f32 %v583_v51, %v582_v48 }
  0xe8   :  { %v585_v54 = vpop.f32.mrf.mxu1  ;;  %v335_v55 = vadd.f32 %v562_v52, %v498_v49 }
  0xe9   :  { %v564_v57 = vpop.f32.mrf.mxu0 }
  0xea   :  { %v586_v58 = vpop.f32.mrf.mxu1  ;;  %v375_v59 = vadd.f32 %v584_v56, %v335_v55 }
  0xec   :  { %v380_v60 = vmax.f32 %v375_v59, 0.0 }
  0xee   :  { %v381_v61 = vpack.c.bf16 %v380_v60, %v380_v60 }
  0xf0   :  { %614 = vmatmul.mubr.bf16.vlgmr.msra.gmra.mxu0 %v381_v61 }
 0x1b0   :  { %v487_v63 = vpop.f32.mrf.mxu0 }
 0x1b1   :  { %v488_v0 = vadd.f32 %v535_v62, %v487_v63 }
 0x1b2   :  { %v615_v1 = vpop.f32.mrf.mxu0 }
 0x1b3   :  { %493 = vst [vmem:[%s835_s5] sm:$0xff] %v488_v0 }
 0x1b4   :  { %v490_v2 = vpop.f32.mrf.mxu0 }
 0x1b6   :  { %v616_v3 = vpop.f32.mrf.mxu0 }

</bundles_post_ra>
